<compile_context>
chip_gen: v6e
topology: v6e:2x2x1
jax: 0.10.0
libtpu: 0.0.40
codegen_flags: <defaults>
</compile_context>

<pallas_src>
import jax
import jax.numpy as jnp
from jax.experimental import pallas as pl
from jax.experimental.pallas import tpu as pltpu


# ----------------------------------------------------------------------------
# Path A: single HBM->HBM DMA (default materializing path).
# ----------------------------------------------------------------------------
def _dma_copy_kernel(x_hbm_ref, o_hbm_ref, sem):
    cp = pltpu.make_async_copy(x_hbm_ref, o_hbm_ref, sem)
    cp.start()
    cp.wait()


def _dma_copy(x):
    nbytes = int(x.size) * x.dtype.itemsize
    return pl.pallas_call(
        _dma_copy_kernel,
        out_shape=jax.ShapeDtypeStruct(x.shape, x.dtype),
        in_specs=[pl.BlockSpec(memory_space=pl.ANY)],
        out_specs=pl.BlockSpec(memory_space=pl.ANY),
        scratch_shapes=[pltpu.SemaphoreType.DMA],
        compiler_params=pltpu.CompilerParams(has_side_effects=True),
        cost_estimate=pl.CostEstimate(
            flops=0, transcendentals=0, bytes_accessed=2 * nbytes),
    )(x)


# ----------------------------------------------------------------------------
# Path B: row-tiled, double-buffered, lane-dense VMEM copy (kept as an option).
# ----------------------------------------------------------------------------
def _copy_kernel(x_ref, o_ref):
    # Pure identity copy of the current (TM, H) row tile; row-major layout is
    # preserved so copy + wrapper metadata reshape reproduces torch .view.
    o_ref[...] = x_ref[...]


# Minimum sublane multiple per element size (f32/bf16/int8 packing rules).
_MIN_SUBLANE = {4: 8, 2: 16, 1: 32}


def _tiled_copy_2d(x2d, tm):
    rows, H = x2d.shape
    itemsize = x2d.dtype.itemsize
    min_rows = _MIN_SUBLANE.get(itemsize, 8)

    # Cap tm so the grid has >=2 blocks when rows permit (megacore sharding),
    # then round DOWN to the dtype-aware sublane multiple.  The ragged last
    # block (if any) is masked by Pallas — no divisor-halving loop.
    tm = min(tm, max(rows // 2, min_rows), rows)
    tm = max((tm // min_rows) * min_rows, min(min_rows, rows))
    grid = (pl.cdiv(rows, tm),)

    # 2 refs x 2 pipeline buffers; give the compiler headroom when large.
    buf_bytes = 4 * tm * H * itemsize
    vmem_limit = min(max(buf_bytes + (4 << 20), 16 << 20), 30 << 20)

    nbytes = rows * H * itemsize
    return pl.pallas_call(
        _copy_kernel,
        out_shape=jax.ShapeDtypeStruct((rows, H), x2d.dtype),
        grid=grid,
        in_specs=[pl.BlockSpec((tm, H), lambda i: (i, 0))],
        out_specs=pl.BlockSpec((tm, H), lambda i: (i, 0)),
        compiler_params=pltpu.CompilerParams(
            dimension_semantics=("parallel",),
            vmem_limit_bytes=vmem_limit),
        cost_estimate=pl.CostEstimate(
            flops=0, transcendentals=0, bytes_accessed=2 * nbytes),
    )(x2d)


# ----------------------------------------------------------------------------
# Module forward: x72 = x71 + (heads, head_dim); return x67.view(x72)
# ----------------------------------------------------------------------------
def view_as_heads(x67, x71, heads, head_dim, *, materialize=False,
                  method="dma", tm=1024):
    """materialize=False (default): zero-cost metadata reshape (== torch .view).
    materialize=True: fresh buffer via a Pallas copy, then metadata reshape.
      method="dma"   -> single HBM->HBM DMA (recommended).
      method="tiled" -> row-tiled, pipelined VMEM copy.
    """
    B, S, H = x67.shape
    assert tuple(x71) == (B, S)
    assert H == heads * head_dim
    x72 = tuple(x71) + (heads, head_dim)  # operator.add on tuples = concat

    if not materialize:
        return x67.reshape(x72)

    if method == "dma":
        out = _dma_copy(x67)
        return out.reshape(x72)

    # method == "tiled"
    x2d = x67.reshape(B * S, H)
    out2d = _tiled_copy_2d(x2d, tm)
    return out2d.reshape(x72)


if __name__ == "__main__":
    # Small shapes consistent with the module (original: B=1, S=384, H=768,
    # heads=12, head_dim=64).  Keep H=768 so the lane dim stays a multiple of
    # 128; shrink the sequence length.
    B, S, heads, head_dim = 1, 128, 12, 64
    H = heads * head_dim  # 768

    key = jax.random.PRNGKey(0)
    x67 = jax.random.normal(key, (B, S, H), dtype=jnp.float32)
    x71 = (B, S)

    expected = x67.reshape(x71 + (heads, head_dim))

    # Recommended path: zero-cost view (no kernel).
    out_view = jax.block_until_ready(view_as_heads(x67, x71, heads, head_dim))
    assert out_view.shape == (B, S, heads, head_dim), out_view.shape
    assert out_view.dtype == x67.dtype
    assert bool(jnp.allclose(out_view, expected)), "view path mismatch"

    # Materializing path A: single HBM->HBM DMA copy + metadata reshape.
    out_dma = jax.block_until_ready(
        view_as_heads(x67, x71, heads, head_dim, materialize=True,
                      method="dma"))
    assert out_dma.shape == (B, S, heads, head_dim), out_dma.shape
    assert out_dma.dtype == x67.dtype
    assert bool(jnp.allclose(out_dma, expected)), "dma path mismatch"

    # Materializing path B: row-tiled pipelined copy + metadata reshape.
    out_tiled = jax.block_until_ready(
        view_as_heads(x67, x71, heads, head_dim, materialize=True,
                      method="tiled", tm=1024))
    assert out_tiled.shape == (B, S, heads, head_dim), out_tiled.shape
    assert out_tiled.dtype == x67.dtype
    assert bool(jnp.allclose(out_tiled, expected)), "tiled path mismatch"

    print("KERNEL_OK")
</pallas_src>

<mosaic_0001>
module attributes {stable_mosaic.version = 11 : i64} {
  func.func @_dma_copy_kernel(%arg0: memref<1x128x768xf32, #tpu.memory_space<any>>, %arg1: memref<1x128x768xf32, #tpu.memory_space<any>>, %arg2: memref<!tpu.dma_semaphore, #tpu.memory_space<semaphore_mem>>) attributes {dimension_semantics = [], scalar_prefetch = 0 : i64, scratch_operands = 1 : i64, tpu.core_type = #tpu.core_type<tc>} {
    tpu.enqueue_dma source(%arg0 : memref<1x128x768xf32, #tpu.memory_space<any>>) target(%arg1 : memref<1x128x768xf32, #tpu.memory_space<any>>) target_semaphore(%arg2 : memref<!tpu.dma_semaphore, #tpu.memory_space<semaphore_mem>>)
    tpu.wait_dma2 semaphore(%arg2 : memref<!tpu.dma_semaphore, #tpu.memory_space<semaphore_mem>>) src(%arg0 : memref<1x128x768xf32, #tpu.memory_space<any>>) dst(%arg1 : memref<1x128x768xf32, #tpu.memory_space<any>>)
    return
  }
}

</mosaic_0001>

<bundles_post_ra>
// kernel: tpu_custom_call.1
= control target key start
LH: loop header
LB: loop body
LE: loop exit
PB: predicated region body
PF: predicated region fallthrough
CT: control target
= control target key end

     0   :  { %s30_s6 = smov [#allocation2]   ;;  %s31_s7 = smov 131072   ;;  %s49_s0 = inlined_call_operand.hbm [shape: f32[1,128,768], index: 0, kind: input, shape index: {}]   ;;  %s50_s1 = inlined_call_operand.hbm [shape: f32[1,128,768], index: 1, kind: output, shape index: {}]  }
   0x1   :  { %s32_s8 = smov 0  }
   0x2   :  { %12 = dma.general %s49_s0, 12288, %s50_s1, %s30_s6, %s31_s7, [#allocation4], %s32_s8, 0  }
   0x3   :  { %28 = dma.done.wait [#allocation2], 12288 }
   0x4   :  { %29 = vsyncadd [#allocation2], 4294955008 }
   0x5   :  { %18 = vsyncmov [#allocation2] }
   0x8   :  { %s19_s13 = vpop.sfrf %18 }
   0x9   :  { %p24_p0 = scmp.ne.s32.totalorder %s19_s13, 0 }
   0xb   :  { %23 = shalt.err (%p24_p0)  }

</bundles_post_ra>
